<compile_context>
chip_gen: v7x
topology: tpu7x:2x2x1
jax: 0.10.0
libtpu: 0.0.40
codegen_flags: <defaults>
</compile_context>

<pallas_src>
import jax
import jax.numpy as jnp
from jax.experimental import pallas as pl
from jax.experimental.pallas import tpu as pltpu

NUM_NODES = 19
HIDDEN = 32
EPS = 1e-5             # BatchNorm1d default eps


def gnn_kernel(x_ref, w1_ref, w2_ref, w3_ref, bias_ref, out_ref):
    # x_ref   : (tile, NUM_NODES)        -- natural layout, batch on sublanes
    # w1_ref  : (NUM_NODES, HIDDEN)      = adj @ W1 * bn1_scale
    # w2_ref  : (HIDDEN, 2*HIDDEN)       = W2 * bn2_scale
    # w3_ref  : (2*HIDDEN, NUM_NODES)    = W3
    # bias_ref: (8, 128) packed rows: [b1' | b2' | b3]
    x = x_ref[...]
    b1 = bias_ref[0:1, 0:HIDDEN]                 # (1, 32)
    b2 = bias_ref[1:2, 0:2 * HIDDEN]             # (1, 64)
    b3 = bias_ref[2:3, 0:NUM_NODES]              # (1, 19)

    # gc1 (adj + bn1 folded in) + relu   (dropout = identity in eval mode)
    h = jnp.dot(x, w1_ref[...], preferred_element_type=jnp.float32) + b1
    h = jnp.maximum(h, 0.0)
    # gc2 (bn2 folded in) + relu
    h = jnp.dot(h, w2_ref[...], preferred_element_type=jnp.float32) + b2
    h = jnp.maximum(h, 0.0)
    # gc5
    out_ref[...] = jnp.dot(h, w3_ref[...], preferred_element_type=jnp.float32) + b3


def fold_params(adj, p):
    """Fold eval-mode BatchNorm and the `x @ adj` step into GC weights/biases."""
    s1 = p["g1"] * jax.lax.rsqrt(p["v1"] + EPS)            # (32,)
    w1 = (adj @ p["w1"]) * s1                              # (19, 32)
    b1 = (p["b1"] - p["m1"]) * s1 + p["be1"]               # (32,)
    s2 = p["g2"] * jax.lax.rsqrt(p["v2"] + EPS)            # (64,)
    w2 = p["w2"] * s2                                      # (32, 64)
    b2 = (p["b2"] - p["m2"]) * s2 + p["be2"]               # (64,)
    w3, b3 = p["w3"], p["b3"]                              # (64, 19), (19,)

    # One (8,128) resident tile holding all three bias rows (single tiny DMA;
    # every slice starts at lane 0 so no in-kernel lane realignment needed).
    bias_pack = jnp.zeros((8, 128), jnp.float32)
    bias_pack = bias_pack.at[0, 0:HIDDEN].set(b1)
    bias_pack = bias_pack.at[1, 0:2 * HIDDEN].set(b2)
    bias_pack = bias_pack.at[2, 0:NUM_NODES].set(b3)
    return w1, w2, w3, bias_pack


def gnn_forward(x, adj, params, tile_b=8192):
    """x: (B, NUM_NODES), adj: (NUM_NODES, NUM_NODES) -> (B, NUM_NODES)."""
    B = x.shape[0]
    w1, w2, w3, bias_pack = fold_params(adj, params)

    # --- tile selection ---------------------------------------------------
    if B < 256:
        tile = B                                   # single block (full-dim OK)
    else:
        cap = max(128, (tile_b // 128) * 128)      # lane-aligned streaming cap
        # Always produce >= 2 grid blocks so v7x's second TensorCore gets work
        # under dimension_semantics=("parallel",).
        half = ((pl.cdiv(B, 2) + 127) // 128) * 128
        tile = min(cap, half)
    grid = (pl.cdiv(B, tile),)

    # --- VMEM budget ------------------------------------------------------
    # x / out blocks lane-pad 19 -> 128: 512*tile bytes each, double-buffered,
    # plus lane-padded f32 intermediates (h1, h2, result) -> ~8 such buffers
    # worst case.  Set the scoped-VMEM limit explicitly (v5e default is only
    # 16 MiB; cap below v7x's 64 MiB physical per-core VMEM).
    est_vmem = 8 * tile * 128 * 4 + (1 << 20)
    vmem_limit = int(min(48 * 2**20, max(32 * 2**20, 1.3 * est_vmem)))

    flops = 2 * B * (NUM_NODES * HIDDEN + HIDDEN * 2 * HIDDEN + 2 * HIDDEN * NUM_NODES)
    bytes_accessed = 4 * (2 * B * NUM_NODES
                          + w1.size + w2.size + w3.size + bias_pack.size)

    out = pl.pallas_call(
        gnn_kernel,
        out_shape=jax.ShapeDtypeStruct((B, NUM_NODES), jnp.float32),
        grid=grid,
        in_specs=[
            pl.BlockSpec((tile, NUM_NODES), lambda i: (i, 0)),         # x (streamed)
            pl.BlockSpec((NUM_NODES, HIDDEN), lambda i: (0, 0)),       # W1' (resident)
            pl.BlockSpec((HIDDEN, 2 * HIDDEN), lambda i: (0, 0)),      # W2' (resident)
            pl.BlockSpec((2 * HIDDEN, NUM_NODES), lambda i: (0, 0)),   # W3  (resident)
            pl.BlockSpec((8, 128), lambda i: (0, 0)),                  # packed biases
        ],
        out_specs=pl.BlockSpec((tile, NUM_NODES), lambda i: (i, 0)),
        compiler_params=pltpu.CompilerParams(
            dimension_semantics=("parallel",),
            vmem_limit_bytes=vmem_limit,
        ),
        cost_estimate=pl.CostEstimate(
            flops=flops, transcendentals=0, bytes_accessed=bytes_accessed),
    )(x, w1, w2, w3, bias_pack)
    return out


def kaiming_uniform(key, shape):
    # Matches nn.init.kaiming_uniform_ on an (in, out) weight:
    # PyTorch's _calculate_fan_in_and_fan_out uses fan_in = tensor.size(1).
    fan_in = shape[1]
    bound = (6.0 / fan_in) ** 0.5
    return jax.random.uniform(key, shape, jnp.float32, minval=-bound, maxval=bound)


def init_params(key):
    k1, k2, k3 = jax.random.split(key, 3)
    p = {}
    # gc1: num_nodes -> hidden
    p["w1"] = kaiming_uniform(k1, (NUM_NODES, HIDDEN))
    p["b1"] = jnp.zeros((HIDDEN,), jnp.float32)
    # bn1 (PyTorch defaults: gamma=1, beta=0, running_mean=0, running_var=1)
    p["g1"] = jnp.ones((HIDDEN,), jnp.float32)
    p["be1"] = jnp.zeros((HIDDEN,), jnp.float32)
    p["m1"] = jnp.zeros((HIDDEN,), jnp.float32)
    p["v1"] = jnp.ones((HIDDEN,), jnp.float32)
    # gc2: hidden -> 2*hidden
    p["w2"] = kaiming_uniform(k2, (HIDDEN, 2 * HIDDEN))
    p["b2"] = jnp.zeros((2 * HIDDEN,), jnp.float32)
    # bn2
    p["g2"] = jnp.ones((2 * HIDDEN,), jnp.float32)
    p["be2"] = jnp.zeros((2 * HIDDEN,), jnp.float32)
    p["m2"] = jnp.zeros((2 * HIDDEN,), jnp.float32)
    p["v2"] = jnp.ones((2 * HIDDEN,), jnp.float32)
    # gc5: 2*hidden -> num_nodes
    p["w3"] = kaiming_uniform(k3, (2 * HIDDEN, NUM_NODES))
    p["b3"] = jnp.zeros((NUM_NODES,), jnp.float32)
    return p


def gnn_reference(x, adj, p):
    """Pure-JAX reference of the PyTorch forward (eval-mode BN/Dropout)."""
    h = (x @ adj) @ p["w1"] + p["b1"]
    h = (h - p["m1"]) * (p["g1"] * jax.lax.rsqrt(p["v1"] + EPS)) + p["be1"]
    h = jnp.maximum(h, 0.0)
    h = h @ p["w2"] + p["b2"]
    h = (h - p["m2"]) * (p["g2"] * jax.lax.rsqrt(p["v2"] + EPS)) + p["be2"]
    h = jnp.maximum(h, 0.0)
    return h @ p["w3"] + p["b3"]


if __name__ == "__main__":
    key = jax.random.PRNGKey(0)
    kx, ka, kp = jax.random.split(key, 3)

    adj = jax.random.uniform(ka, (NUM_NODES, NUM_NODES), jnp.float32)
    params = init_params(kp)

    # Exercise both the single-block path (B=8) and the streamed multi-block
    # path with a partial last tile (B=384 -> tile=256, grid=(2,)).
    for B in (8, 384):
        x = jax.random.normal(jax.random.fold_in(kx, B), (B, NUM_NODES), jnp.float32)
        out = gnn_forward(x, adj, params)
        jax.block_until_ready(out)
        assert out.shape == (B, NUM_NODES) and out.dtype == jnp.float32

        ref = gnn_reference(x, adj, params)
        # BN/adj folding reassociates float ops -> allow tiny numeric drift.
        assert bool(jnp.allclose(out, ref, rtol=1e-3, atol=1e-3)), (
            B, float(jnp.max(jnp.abs(out - ref))))

    print("KERNEL_OK")
</pallas_src>

<mosaic_0001>
module attributes {stable_mosaic.version = 11 : i64} {
  func.func @gnn_kernel(%arg0: i32, %arg1: memref<8x19xf32, #tpu.memory_space<vmem>>, %arg2: memref<19x32xf32, #tpu.memory_space<vmem>>, %arg3: memref<32x64xf32, #tpu.memory_space<vmem>>, %arg4: memref<64x19xf32, #tpu.memory_space<vmem>>, %arg5: memref<8x128xf32, #tpu.memory_space<vmem>>, %arg6: memref<8x19xf32, #tpu.memory_space<vmem>>) attributes {dimension_semantics = [#tpu.dimension_semantics<parallel>], iteration_bounds = array<i64: 1>, scalar_prefetch = 0 : i64, scratch_operands = 0 : i64, tpu.core_type = #tpu.core_type<tc>, window_params = [{transform_indices = @transform_0, window_bounds = array<i64: 8, 19>}, {pipeline_mode = #tpu.pipeline_mode<synchronous>, transform_indices = @transform_1, window_bounds = array<i64: 19, 32>}, {pipeline_mode = #tpu.pipeline_mode<synchronous>, transform_indices = @transform_2, window_bounds = array<i64: 32, 64>}, {pipeline_mode = #tpu.pipeline_mode<synchronous>, transform_indices = @transform_3, window_bounds = array<i64: 64, 19>}, {pipeline_mode = #tpu.pipeline_mode<synchronous>, transform_indices = @transform_4, window_bounds = array<i64: 8, 128>}, {transform_indices = @transform_5, window_bounds = array<i64: 8, 19>}]} {
    %c0 = arith.constant 0 : index
    %c0_0 = arith.constant 0 : index
    %0 = vector.load %arg1[%c0, %c0_0] : memref<8x19xf32, #tpu.memory_space<vmem>>, vector<8x19xf32>
    %c0_1 = arith.constant 0 : index
    %c0_2 = arith.constant 0 : index
    %1 = vector.load %arg5[%c0_1, %c0_2] : memref<8x128xf32, #tpu.memory_space<vmem>>, vector<1x32xf32>
    %c1 = arith.constant 1 : index
    %c0_3 = arith.constant 0 : index
    %2 = vector.load %arg5[%c1, %c0_3] : memref<8x128xf32, #tpu.memory_space<vmem>>, vector<1x64xf32>
    %c2 = arith.constant 2 : index
    %c0_4 = arith.constant 0 : index
    %3 = vector.load %arg5[%c2, %c0_4] : memref<8x128xf32, #tpu.memory_space<vmem>>, vector<1x19xf32>
    %c0_5 = arith.constant 0 : index
    %c0_6 = arith.constant 0 : index
    %4 = vector.load %arg2[%c0_5, %c0_6] : memref<19x32xf32, #tpu.memory_space<vmem>>, vector<19x32xf32>
    %cst = arith.constant dense<0.000000e+00> : vector<8x32xf32>
    %5 = tpu.matmul %0, %4, %cst {dimension_numbers = #tpu.dot_dimension_numbers<[1], [0], [0], [1], [0, 0, 1, 1], [], []>} : vector<8x19xf32>, vector<19x32xf32>, vector<8x32xf32> -> vector<8x32xf32>
    %6 = vector.broadcast %1 : vector<1x32xf32> to vector<8x32xf32>
    %7 = arith.addf %5, %6 : vector<8x32xf32>
    %cst_7 = arith.constant 0.000000e+00 : f32
    %8 = vector.broadcast %cst_7 : f32 to vector<8x32xf32>
    %9 = arith.maximumf %7, %8 : vector<8x32xf32>
    %c0_8 = arith.constant 0 : index
    %c0_9 = arith.constant 0 : index
    %10 = vector.load %arg3[%c0_8, %c0_9] : memref<32x64xf32, #tpu.memory_space<vmem>>, vector<32x64xf32>
    %cst_10 = arith.constant dense<0.000000e+00> : vector<8x64xf32>
    %11 = tpu.matmul %9, %10, %cst_10 {dimension_numbers = #tpu.dot_dimension_numbers<[1], [0], [0], [1], [0, 0, 1, 1], [], []>} : vector<8x32xf32>, vector<32x64xf32>, vector<8x64xf32> -> vector<8x64xf32>
    %12 = vector.broadcast %2 : vector<1x64xf32> to vector<8x64xf32>
    %13 = arith.addf %11, %12 : vector<8x64xf32>
    %cst_11 = arith.constant 0.000000e+00 : f32
    %14 = vector.broadcast %cst_11 : f32 to vector<8x64xf32>
    %15 = arith.maximumf %13, %14 : vector<8x64xf32>
    %c0_12 = arith.constant 0 : index
    %c0_13 = arith.constant 0 : index
    %16 = vector.load %arg4[%c0_12, %c0_13] : memref<64x19xf32, #tpu.memory_space<vmem>>, vector<64x19xf32>
    %cst_14 = arith.constant dense<0.000000e+00> : vector<8x19xf32>
    %17 = tpu.matmul %15, %16, %cst_14 {dimension_numbers = #tpu.dot_dimension_numbers<[1], [0], [0], [1], [0, 0, 1, 1], [], []>} : vector<8x64xf32>, vector<64x19xf32>, vector<8x19xf32> -> vector<8x19xf32>
    %18 = vector.broadcast %3 : vector<1x19xf32> to vector<8x19xf32>
    %19 = arith.addf %17, %18 : vector<8x19xf32>
    %c0_15 = arith.constant 0 : index
    %c0_16 = arith.constant 0 : index
    %20 = vector.load %arg6[%c0_15, %c0_16] : memref<8x19xf32, #tpu.memory_space<vmem>>, vector<8x19xf32>
    tpu.vector_store %arg6[%c0_15, %c0_16], %19 {strides = array<i32>} : memref<8x19xf32, #tpu.memory_space<vmem>>, vector<8x19xf32>,
    return
  }
  func.func @transform_0(%arg0: i32) -> (i32, i32) {
    %c0_i32 = arith.constant 0 : i32
    %c0_i32_0 = arith.constant 0 : i32
    return %arg0, %c0_i32 : i32, i32
  }
  func.func @transform_1(%arg0: i32) -> (i32, i32) {
    %c0_i32 = arith.constant 0 : i32
    %c0_i32_0 = arith.constant 0 : i32
    %c0_i32_1 = arith.constant 0 : i32
    return %c0_i32, %c0_i32_0 : i32, i32
  }
  func.func @transform_2(%arg0: i32) -> (i32, i32) {
    %c0_i32 = arith.constant 0 : i32
    %c0_i32_0 = arith.constant 0 : i32
    %c0_i32_1 = arith.constant 0 : i32
    return %c0_i32, %c0_i32_0 : i32, i32
  }
  func.func @transform_3(%arg0: i32) -> (i32, i32) {
    %c0_i32 = arith.constant 0 : i32
    %c0_i32_0 = arith.constant 0 : i32
    %c0_i32_1 = arith.constant 0 : i32
    return %c0_i32, %c0_i32_0 : i32, i32
  }
  func.func @transform_4(%arg0: i32) -> (i32, i32) {
    %c0_i32 = arith.constant 0 : i32
    %c0_i32_0 = arith.constant 0 : i32
    %c0_i32_1 = arith.constant 0 : i32
    return %c0_i32, %c0_i32_0 : i32, i32
  }
  func.func @transform_5(%arg0: i32) -> (i32, i32) {
    %c0_i32 = arith.constant 0 : i32
    %c0_i32_0 = arith.constant 0 : i32
    return %arg0, %c0_i32 : i32, i32
  }
}

</mosaic_0001>

<bundles_post_ra>
// kernel: tpu_custom_call.1
= control target key start
LH: loop header
LB: loop body
LE: loop exit
PB: predicated region body
PF: predicated region fallthrough
CT: control target
= control target key end

     0   :  { %v408_v2 = vmov 0.0|0.0   ;;  %vm409_vm0 = vmmov 0   ;;  %v410_v4 = vmov 0.0   ;;  %s516_s0 = inlined_call_operand.vmem [shape: f32[8,19], index: 0, kind: input, shape index: {}]   ;;  %s517_s1 = inlined_call_operand.vmem [shape: f32[19,32], index: 1, kind: input, shape index: {}]   ;;  %s518_s2 = inlined_call_operand.vmem [shape: f32[32,64], index: 2, kind: input, shape index: {}]   ;;  %s519_s3 = inlined_call_operand.vmem [shape: f32[64,19], index: 3, kind: input, shape index: {}]   ;;  %s520_s4 = inlined_call_operand.vmem [shape: f32[8,128], index: 4, kind: input, shape index: {}]   ;;  %s521_s5 = inlined_call_operand.hbm [shape: f32[8,19], index: 5, kind: output, shape index: {}]  }
   0x1   :  { %v25_v0 = vld [vmem:[%s517_s1] sm:$0xff]  ;;  %v26_v1 = vld [vmem:[%s517_s1 + $0x8] sm:$0xff]  ;;  %359 = vmatprep.subr.bf16.mxu1 %v408_v2  ;;  %368 = vmatprep.subr.bf16.mxu0 %v408_v2 }
   0x2   :  { %v360_v3 = vpack.c.bf16 %v26_v1, %v25_v0  ;;  %326 = vmatprep.mubr.msk.f32.mxu1 %vm409_vm0, %v410_v4  ;;  %v111_v5 = vld [vmem:[%s518_s2] sm:$0xff]  ;;  %v112_v6 = vld [vmem:[%s518_s2 + $0x8] sm:$0xff]  ;;  %356 = vmatprep.mubr.msk.f32.mxu0 %vm409_vm0, %v410_v4 }
   0x3   :  { %10 = vsyncpa [#allocation3], 0  ;;  %v27_v7 = vld [vmem:[%s517_s1 + $0x10] sm:$0x7]  ;;  %vm36_vm1 = vcmask 1042432   ;;  %v21_v8 = vld [vmem:[%s516_s0] sm:$0xff]  ;;  %v363_v9 = vpack.c.bf16 %v112_v6, %v111_v5 }
   0x4   :  { %361 = vmatpush3.bf16.msra.mxu1 %v360_v3  ;;  %vm32_vm2 = vcmask 154624   ;;  %v113_v10 = vld [vmem:[%s518_s2 + $0x10] sm:$0xff]  ;;  %v114_v11 = vld [vmem:[%s518_s2 + $0x18] sm:$0xff]  ;;  %v194_v13 = vld [vmem:[%s519_s3] sm:$0xff]  ;;  %vm119_vm3 = vcmask 261120   ;;  %vm206_vm4 = vcmask 523264  }
   0x5   :  { %324 = vmatprep.subr.mxu1 %v410_v4  ;;  %v366_v12 = vpack.c.bf16 %v114_v11, %v113_v10  ;;  %v195_v14 = vld [vmem:[%s519_s3 + $0x8] sm:$0xff]  ;;  %v196_v15 = vld [vmem:[%s519_s3 + $0x10] sm:$0xff]  ;;  %v197_v17 = vld [vmem:[%s519_s3 + $0x18] sm:$0xff]  ;;  %s411_s28 = smov [#allocation2]  }
   0x6   :  { %v369_v16 = vpack.c.bf16 %v195_v14, %v194_v13  ;;  %v372_v18 = vpack.c.bf16 %v197_v17, %v196_v15  ;;  %v198_v19 = vld [vmem:[%s519_s3 + $0x20] sm:$0xff]  ;;  %v199_v20 = vld [vmem:[%s519_s3 + $0x28] sm:$0xff]  ;;  %v200_v27 = vld [vmem:[%s519_s3 + $0x30] sm:$0xff]  ;;  %s287_s29 = sshll.u32 %s411_s28, 4  ;;  %s288_s29 = int_to_ptr.vmem [resolvable:$true] %s287_s29 }
   0x7   :  { %v375_v21 = vpack.c.bf16 %v199_v20, %v198_v19  ;;  %v295_v22 = vld [vmem:[%s520_s4] ss:$0 sm:$0xff]  ;;  %v201_v28 = vld [vmem:[%s519_s3 + $0x38] sm:$0xff]  ;;  %v298_v30 = vld [vmem:[%s520_s4 + $0x1] ss:$0 sm:$0xff]  ;;  %s384_s3 = scalar_lea.vmem %s288_s29, 128  ;;  %p389_p1 = scmp.lt.s32.totalorder %s288_s29, %s288_s29 }
   0x8   :  { %325 = vmatpush3.msk.msra.mxu1 %vm36_vm1, %v27_v7  ;;  %370 = vmatpush3.bf16.msra.mxu0 %v369_v16  ;;  %v378_v29 = vpack.c.bf16 %v201_v28, %v200_v27  ;;  %v300_v35 = vld [vmem:[%s520_s4 + $0x2] ss:$0 sm:$0xff]  ;;  %p385_p0 = scmp.ne.s32.totalorder %s288_s29, %s384_s3  ;;  %p390_p2 = scmp.lt.s32.totalorder %s384_s3, %s384_s3 }
   0x9   :  { %327 = vmatmul.mubr.msk.f32.vlgmr.msra.gmra.mrb[0].mxu1 %vm32_vm2, %v21_v8  ;;  %362 = vmatprep.subr.bf16.mxu1 %v408_v2 }
   0xa   :  { %364 = vmatpush3.bf16.msra.mxu1 %v363_v9  ;;  %337 = vmatprep.mubr.msk.f32.mxu1 %vm409_vm0, %v410_v4  ;;  %p391_p3 = por %p390_p2, %p389_p1 }
   0xb   :  { %365 = vmatprep.subr.bf16.mxu1 %v408_v2  ;;  %371 = vmatprep.subr.bf16.mxu0 %v408_v2 }
   0xc   :  { %373 = vmatpush3.bf16.msra.mxu0 %v372_v18  ;;  %p392_p4 = pnand %p391_p3, %p385_p0 }
   0xd   :  { %374 = vmatprep.subr.bf16.mxu0 %v408_v2 }
   0xe   :  { %367 = vmatpush3.bf16.msra.mxu1 %v366_v12 }
  0x10   :  { %376 = vmatpush3.bf16.msra.mxu0 %v375_v21 }
  0x11   :  { %377 = vmatprep.subr.bf16.mxu0 %v408_v2 }
  0x14   :  { %379 = vmatpush3.bf16.msra.mxu0 %v378_v29 }
  0xdc   :  { %v106_v23 = vpop.f32.mrb[0].mxu1 }
  0xdd   :  { %v107_v24 = vadd.f32 %v295_v22, %v106_v23  ;;  %v328_v25 = vpop.f32.mrb[1].mxu1 }
  0xdf   :  { %v110_v26 = vmax.f32 %v107_v24, 0.0 }
  0xe1   :  { %338 = vmatmul.mubr.msk.f32.vlgmr.msra.gmra.mrb[2].mxu1 %vm119_vm3, %v110_v26 }
 0x1b4   :  { %v189_v31 = vpop.f32.mrb[2].mxu1 }
 0x1b5   :  { %v190_v32 = vadd.f32 %v298_v30, %v189_v31  ;;  %v339_v33 = vpop.f32.mrb[3].mxu1 }
 0x1b7   :  { %v193_v34 = vmax.f32 %v190_v32, 0.0 }
 0x1b9   :  { %357 = vmatmul.mubr.msk.f32.vlgmr.msra.gmra.mrb[0].mxu0 %vm206_vm4, %v193_v34 }
 0x28c   :  { %v276_v36 = vpop.f32.mrb[0].mxu0 }
 0x28d   :  { %v277_v37 = vadd.f32 %v300_v35, %v276_v36  ;;  %v358_v38 = vpop.f32.mrb[1].mxu0 }
 0x28f   :  { %280 = vst.msk [vmem:[#allocation2] sm:$0xff] %vm32_vm2, %v277_v37 }
 0x290   :  { %395 = shalt.err (!%p392_p4)
}
 0x291   :  { %s396_s1 = scalar_lea.hbm %s521_s5, 128 }
 0x292   :  { %p397_p5 = scmp.ne.s32.totalorder %s521_s5, %s396_s1  ;;  %p400_p6 = scmp.lt.u32.totalorder %s396_s1, %s521_s5 }
 0x294   :  { %p402_p7 = pnand %p400_p6, %p397_p5 }
 0x296   :  { %405 = shalt.err (!%p402_p7)
}
 0x297   :  { %290 = dma.vmem_to_hbm [thread:$0]  %s288_s29, 128, %s521_s5, [#allocation3]  }
 0x298   :  { %406 = dma.done.wait [#allocation3], 128  }
 0x299   :  { %407 = vsyncadd [#allocation3], 4294967168 }
 0x29a   :  { %294 = vsyncpa [#allocation3], 1 }

</bundles_post_ra>
